<compile_context>
chip_gen: v7x
topology: tpu7x:2x2x1
jax: 0.10.0
libtpu: 0.0.40
codegen_flags: <defaults>
</compile_context>

<pallas_src>
import math
import functools

import jax
import jax.numpy as jnp
from jax import lax
from jax.experimental import pallas as pl
from jax.experimental.pallas import tpu as pltpu


def _layernorm(x, gamma, beta, eps=1e-6):
    mu = jnp.mean(x, axis=-1, keepdims=True)
    var = jnp.mean((x - mu) ** 2, axis=-1, keepdims=True)
    return (x - mu) * lax.rsqrt(var + eps) * gamma + beta


def _silu(x):
    return x * jax.nn.sigmoid(x)


# --------------------------------------------------------------------------
# Kernel A: LayerNorm1 + fused QKV projection (seq-tiled).
# Emits q (pre-scaled by 1/sqrt(head_dim)), k, v as bf16 head-major
# (B, heads, L, D) slabs -- the (tl, H) -> (heads, tl, D) relayout happens
# in-VMEM via 128-aligned lane slices + per-head sub-ref stores.
# --------------------------------------------------------------------------
def norm1_qkv_kernel(x_ref, g1_ref, be1_ref, w_qkv_ref, b_qkv_ref,
                     q_ref, k_ref, v_ref, *, hidden, heads_num, head_dim,
                     scale):
    x = x_ref[0]                                           # (tl, H) f32
    nx = _layernorm(x, g1_ref[...], be1_ref[...])          # f32
    qkv = jnp.dot(nx.astype(jnp.bfloat16), w_qkv_ref[...],
                  preferred_element_type=jnp.float32) + b_qkv_ref[...]
    for h in range(heads_num):
        lo = h * head_dim
        hi = lo + head_dim
        q_ref[0, h] = (qkv[:, lo:hi] * scale).astype(jnp.bfloat16)
        k_ref[0, h] = qkv[:, hidden + lo:hidden + hi].astype(jnp.bfloat16)
        v_ref[0, h] = qkv[:, 2 * hidden + lo:2 * hidden + hi].astype(jnp.bfloat16)


# --------------------------------------------------------------------------
# Kernel B: heads-batched attention + out-proj + adaLN-gated residual +
# LayerNorm2 + MLP + gated residual. Gridded over (batch, query tiles);
# per-batch valid lengths arrive via scalar prefetch, adaLN gates arrive
# precomputed from the wrapper.
# --------------------------------------------------------------------------
def attn_mlp_kernel(lens_ref,
                    x_ref, gates_ref, q_ref, k_ref, v_ref,
                    w_projh_ref, b_proj_ref,
                    g2_ref, be2_ref,
                    w_mlp1_ref, b_mlp1_ref,
                    w_mlp2_ref, b_mlp2_ref,
                    o_ref, *, heads_num):
    b = pl.program_id(0)
    n_valid = lens_ref[b]                                  # scalar int32 (SMEM)

    x = x_ref[0]                                           # (tq, H)   f32
    hidden = x.shape[-1]
    gates = gates_ref[0]                                   # (1, 2H)   f32
    gate_msa = gates[:, :hidden]                           # (1, H)
    gate_mlp = gates[:, hidden:]                           # (1, H)

    qh = q_ref[0]                                          # (h, tq, D) bf16 (pre-scaled)
    kh = k_ref[0]                                          # (h, L, D)  bf16
    vh = v_ref[0]                                          # (h, L, D)  bf16
    kv_len = kh.shape[1]

    # Heads-batched attention (scale already folded into q).
    s = jnp.einsum('hqd,hkd->hqk', qh, kh,
                   preferred_element_type=jnp.float32)     # (h, tq, L) f32
    # Key-padding mask as an additive (1, 1, L) bias -- O(L) mask work.
    kidx = lax.broadcasted_iota(jnp.int32, (1, 1, kv_len), 2)
    bias = jnp.where(kidx < n_valid, jnp.float32(0.0), jnp.float32(-1e30))
    s = s + bias
    m = jnp.max(s, axis=-1, keepdims=True)
    e = jnp.exp(s - m)
    l = jnp.sum(e, axis=-1, keepdims=True)                 # (h, tq, 1)
    o = jnp.einsum('hqk,hkd->hqd', e.astype(jnp.bfloat16), vh,
                   preferred_element_type=jnp.float32)     # (h, tq, D) f32
    o = o * pl.reciprocal(l, approx=True)                  # deferred normalization

    # Output projection as a K-split over heads:
    #   attn @ W_proj == sum_h o[h] @ W_proj[h*D:(h+1)*D, :]
    # (leading-axis indexing only -> no relayout / concat of head-major o)
    ob = o.astype(jnp.bfloat16)
    proj = jnp.dot(ob[0], w_projh_ref[0], preferred_element_type=jnp.float32)
    for h in range(1, heads_num):
        proj = proj + jnp.dot(ob[h], w_projh_ref[h],
                              preferred_element_type=jnp.float32)
    proj = proj + b_proj_ref[...]

    x = x + proj * gate_msa                                # gated residual 1

    # norm2 + MLP (fc1 -> SiLU -> fc2, drop=0.0) + gated residual 2
    nx2 = _layernorm(x, g2_ref[...], be2_ref[...])
    h1 = _silu(jnp.dot(nx2.astype(jnp.bfloat16), w_mlp1_ref[...],
                       preferred_element_type=jnp.float32) + b_mlp1_ref[...])
    h2 = jnp.dot(h1.astype(jnp.bfloat16), w_mlp2_ref[...],
                 preferred_element_type=jnp.float32) + b_mlp2_ref[...]
    x = x + h2 * gate_mlp

    o_ref[0] = x


# --------------------------------------------------------------------------
# Wrapper
# --------------------------------------------------------------------------
def _default_vmem_limit_bytes():
    """min(100 MiB, 85% of physical VMEM): ~100 MiB on v5e/v6e, ~54 MiB on v7x."""
    try:
        cap = pltpu.get_tpu_info().vmem_capacity_bytes
        return min(100 * 1024 * 1024, int(cap * 0.85))
    except Exception:
        return 64 * 1024 * 1024


def individual_token_refiner_block(x, c, valid_lens, params, *, heads_num,
                                   seq_tile=256, vmem_limit_bytes=None):
    B, L, hidden = x.shape
    assert hidden % heads_num == 0
    head_dim = hidden // heads_num
    scale = 1.0 / math.sqrt(head_dim)

    tl = min(seq_tile, L)
    tq = min(seq_tile, L)
    assert L % tl == 0 and L % tq == 0

    if vmem_limit_bytes is None:
        vmem_limit_bytes = _default_vmem_limit_bytes()

    bf16 = jnp.bfloat16
    f32 = jnp.float32
    w_qkv = params["w_qkv"].astype(bf16)
    w_projh = params["w_proj"].reshape(heads_num, head_dim, hidden).astype(bf16)
    w_mlp1 = params["w_mlp1"].astype(bf16)
    w_mlp2 = params["w_mlp2"].astype(bf16)

    lens = valid_lens.astype(jnp.int32)

    # adaLN gates: one tiny (B, H) @ (H, 2H) matmul per call -- done in plain
    # XLA so kernel B neither recomputes it per tile nor keeps w_ada resident.
    gates = (_silu(c.astype(f32)) @ params["w_ada"].astype(f32)
             + params["b_ada"].astype(f32))                      # (B, 2H)
    gates3 = gates.reshape(B, 1, 2 * hidden)

    single = pl.Buffered(1)   # grid-invariant / per-batch blocks: no double buffer

    # ---------------- Kernel A: norm1 + QKV (head-major out) ----------------
    kA = functools.partial(norm1_qkv_kernel, hidden=hidden, heads_num=heads_num,
                           head_dim=head_dim, scale=scale)
    qkv_out_spec = pl.BlockSpec((1, heads_num, tl, head_dim),
                                lambda b, l: (b, 0, l, 0))
    q, k, v = pl.pallas_call(
        kA,
        grid=(B, L // tl),
        in_specs=[
            pl.BlockSpec((1, tl, hidden), lambda b, l: (b, l, 0)),            # x
            pl.BlockSpec((1, hidden), lambda b, l: (0, 0),
                         pipeline_mode=single),                               # g1
            pl.BlockSpec((1, hidden), lambda b, l: (0, 0),
                         pipeline_mode=single),                               # be1
            pl.BlockSpec((hidden, 3 * hidden), lambda b, l: (0, 0),
                         pipeline_mode=single),                               # w_qkv
            pl.BlockSpec((1, 3 * hidden), lambda b, l: (0, 0),
                         pipeline_mode=single),                               # b_qkv
        ],
        out_specs=[qkv_out_spec, qkv_out_spec, qkv_out_spec],
        out_shape=[jax.ShapeDtypeStruct((B, heads_num, L, head_dim), bf16)] * 3,
        compiler_params=pltpu.CompilerParams(
            dimension_semantics=("parallel", "parallel"),
            vmem_limit_bytes=vmem_limit_bytes),
    )(x, params["g1"], params["be1"], w_qkv, params["b_qkv"])

    # ---------------- Kernel B: attention + out-proj + MLP ----------------
    kB = functools.partial(attn_mlp_kernel, heads_num=heads_num)

    def wspec(a):   # grid-invariant weight: full block, single buffer
        return pl.BlockSpec(a.shape, lambda b, qi, sref: (0,) * a.ndim,
                            pipeline_mode=single)

    grid_spec = pltpu.PrefetchScalarGridSpec(
        num_scalar_prefetch=1,
        grid=(B, L // tq),
        in_specs=[
            pl.BlockSpec((1, tq, hidden), lambda b, qi, sref: (b, qi, 0)),    # x
            pl.BlockSpec((1, 1, 2 * hidden), lambda b, qi, sref: (b, 0, 0)),  # gates
            pl.BlockSpec((1, heads_num, tq, head_dim),
                         lambda b, qi, sref: (b, 0, qi, 0)),                  # q tile
            pl.BlockSpec((1, heads_num, L, head_dim),
                         lambda b, qi, sref: (b, 0, 0, 0),
                         pipeline_mode=single),                               # k (full L)
            pl.BlockSpec((1, heads_num, L, head_dim),
                         lambda b, qi, sref: (b, 0, 0, 0),
                         pipeline_mode=single),                               # v (full L)
            wspec(w_projh), wspec(params["b_proj"]),
            wspec(params["g2"]), wspec(params["be2"]),
            wspec(w_mlp1), wspec(params["b_mlp1"]),
            wspec(w_mlp2), wspec(params["b_mlp2"]),
        ],
        out_specs=pl.BlockSpec((1, tq, hidden), lambda b, qi, sref: (b, qi, 0)),
    )

    return pl.pallas_call(
        kB,
        grid_spec=grid_spec,
        out_shape=jax.ShapeDtypeStruct((B, L, hidden), f32),
        compiler_params=pltpu.CompilerParams(
            dimension_semantics=("parallel", "parallel"),
            vmem_limit_bytes=vmem_limit_bytes),
    )(lens, x, gates3, q, k, v,
      w_projh, params["b_proj"],
      params["g2"], params["be2"],
      w_mlp1, params["b_mlp1"],
      w_mlp2, params["b_mlp2"])


# --------------------------------------------------------------------------
# Pure-JAX f32 reference of the PyTorch forward (key-padding mask from lens).
# --------------------------------------------------------------------------
def reference(x, c, valid_lens, p, heads_num):
    B, L, H = x.shape
    D = H // heads_num

    def ln(y, g, b):
        mu = y.mean(-1, keepdims=True)
        var = ((y - mu) ** 2).mean(-1, keepdims=True)
        return (y - mu) / jnp.sqrt(var + 1e-6) * g + b

    silu = lambda t: t * jax.nn.sigmoid(t)

    col = jnp.arange(L)[None, :]
    key_valid = col < valid_lens[:, None]                 # (B, L)

    gates = silu(c) @ p["w_ada"] + p["b_ada"][0]
    gate_msa = gates[:, None, :H]
    gate_mlp = gates[:, None, H:]

    nx = ln(x, p["g1"][0], p["be1"][0])
    qkv = nx @ p["w_qkv"] + p["b_qkv"][0]
    q, k, v = jnp.split(qkv, 3, axis=-1)
    q = q.reshape(B, L, heads_num, D)
    k = k.reshape(B, L, heads_num, D)
    v = v.reshape(B, L, heads_num, D)
    s = jnp.einsum('blhd,bmhd->bhlm', q, k) / math.sqrt(D)
    s = jnp.where(key_valid[:, None, None, :], s, -1e30)
    pr = jax.nn.softmax(s, axis=-1)
    o = jnp.einsum('bhlm,bmhd->blhd', pr, v).reshape(B, L, H)
    x = x + (o @ p["w_proj"] + p["b_proj"][0]) * gate_msa
    nx2 = ln(x, p["g2"][0], p["be2"][0])
    h1 = silu(nx2 @ p["w_mlp1"] + p["b_mlp1"][0])
    h2 = h1 @ p["w_mlp2"] + p["b_mlp2"][0]
    return x + h2 * gate_mlp


if __name__ == "__main__":
    B, L, hidden, heads = 2, 8, 32, 4
    mlp_hidden = int(hidden * 4.0)

    key = jax.random.PRNGKey(0)
    ks = jax.random.split(key, 16)

    def w(kk, shape, s=0.05):
        return (s * jax.random.normal(kk, shape)).astype(jnp.float32)

    # NOTE: the PyTorch module zero-inits the adaLN weights; small random
    # values are used here so the gated paths are numerically exercised.
    params = {
        "w_ada":  w(ks[0], (hidden, 2 * hidden)),
        "b_ada":  w(ks[1], (1, 2 * hidden)),
        "g1":     jnp.ones((1, hidden), jnp.float32),
        "be1":    jnp.zeros((1, hidden), jnp.float32),
        "w_qkv":  w(ks[2], (hidden, 3 * hidden)),
        "b_qkv":  w(ks[3], (1, 3 * hidden)),
        "w_proj": w(ks[4], (hidden, hidden)),
        "b_proj": w(ks[5], (1, hidden)),
        "g2":     jnp.ones((1, hidden), jnp.float32),
        "be2":    jnp.zeros((1, hidden), jnp.float32),
        "w_mlp1": w(ks[6], (hidden, mlp_hidden)),
        "b_mlp1": w(ks[7], (1, mlp_hidden)),
        "w_mlp2": w(ks[8], (mlp_hidden, hidden)),
        "b_mlp2": w(ks[9], (1, hidden)),
    }

    x = jax.random.normal(ks[10], (B, L, hidden), jnp.float32)
    c = jax.random.normal(ks[11], (B, hidden), jnp.float32)

    # key-padding mask: batch 0 has 8 valid tokens, batch 1 has 5
    valid_lens = jnp.array([8, 5], dtype=jnp.int32)

    out = individual_token_refiner_block(x, c, valid_lens, params,
                                         heads_num=heads)
    out = jax.block_until_ready(out)

    ref = reference(x, c, valid_lens, params, heads)
    # bf16 MXU operands + approx reciprocal vs an all-f32 reference.
    if not bool(jnp.allclose(out, ref, atol=2e-2, rtol=2e-2)):
        err = float(jnp.max(jnp.abs(out - ref)))
        raise AssertionError(f"Pallas kernel does not match JAX reference "
                             f"(max abs err {err})")

    print("KERNEL_OK")
</pallas_src>

<mosaic_0001>
module attributes {stable_mosaic.version = 11 : i64} {
  func.func @norm1_qkv_kernel(%arg0: i32, %arg1: i32, %arg2: memref<1x8x32xf32, #tpu.memory_space<vmem>>, %arg3: memref<1x32xf32, #tpu.memory_space<vmem>>, %arg4: memref<1x32xf32, #tpu.memory_space<vmem>>, %arg5: memref<32x96xbf16, #tpu.memory_space<vmem>>, %arg6: memref<1x96xf32, #tpu.memory_space<vmem>>, %arg7: memref<1x4x8x8xbf16, #tpu.memory_space<vmem>>, %arg8: memref<1x4x8x8xbf16, #tpu.memory_space<vmem>>, %arg9: memref<1x4x8x8xbf16, #tpu.memory_space<vmem>>) attributes {dimension_semantics = [#tpu.dimension_semantics<parallel>, #tpu.dimension_semantics<parallel>], iteration_bounds = array<i64: 2, 1>, scalar_prefetch = 0 : i64, scratch_operands = 0 : i64, tpu.core_type = #tpu.core_type<tc>, window_params = [{transform_indices = @transform_0, window_bounds = array<i64: 1, 8, 32>}, {pipeline_mode = #tpu.pipeline_mode<synchronous>, transform_indices = @transform_1, window_bounds = array<i64: 1, 32>}, {pipeline_mode = #tpu.pipeline_mode<synchronous>, transform_indices = @transform_2, window_bounds = array<i64: 1, 32>}, {pipeline_mode = #tpu.pipeline_mode<synchronous>, transform_indices = @transform_3, window_bounds = array<i64: 32, 96>}, {pipeline_mode = #tpu.pipeline_mode<synchronous>, transform_indices = @transform_4, window_bounds = array<i64: 1, 96>}, {transform_indices = @transform_5, window_bounds = array<i64: 1, 4, 8, 8>}, {transform_indices = @transform_6, window_bounds = array<i64: 1, 4, 8, 8>}, {transform_indices = @transform_7, window_bounds = array<i64: 1, 4, 8, 8>}]} {
    %c0 = arith.constant 0 : index
    %c0_0 = arith.constant 0 : index
    %c0_1 = arith.constant 0 : index
    %0 = vector.load %arg2[%c0, %c0_0, %c0_1] : memref<1x8x32xf32, #tpu.memory_space<vmem>>, vector<1x8x32xf32>
    %1 = vector.shape_cast %0 : vector<1x8x32xf32> to vector<8x32xf32>
    %c0_2 = arith.constant 0 : index
    %c0_3 = arith.constant 0 : index
    %2 = vector.load %arg3[%c0_2, %c0_3] : memref<1x32xf32, #tpu.memory_space<vmem>>, vector<1x32xf32>
    %c0_4 = arith.constant 0 : index
    %c0_5 = arith.constant 0 : index
    %3 = vector.load %arg4[%c0_4, %c0_5] : memref<1x32xf32, #tpu.memory_space<vmem>>, vector<1x32xf32>
    %cst = arith.constant dense<0.000000e+00> : vector<8xf32>
    %4 = vector.multi_reduction <add>, %1, %cst [1] : vector<8x32xf32> to vector<8xf32>
    %5 = vector.shape_cast %4 : vector<8xf32> to vector<8x1xf32>
    %cst_6 = arith.constant 3.200000e+01 : f32
    %6 = vector.broadcast %cst_6 : f32 to vector<8x1xf32>
    %7 = arith.divf %5, %6 : vector<8x1xf32>
    %8 = vector.broadcast %7 : vector<8x1xf32> to vector<8x32xf32>
    %9 = arith.subf %1, %8 : vector<8x32xf32>
    %10 = arith.mulf %9, %9 : vector<8x32xf32>
    %cst_7 = arith.constant dense<0.000000e+00> : vector<8xf32>
    %11 = vector.multi_reduction <add>, %10, %cst_7 [1] : vector<8x32xf32> to vector<8xf32>
    %12 = vector.shape_cast %11 : vector<8xf32> to vector<8x1xf32>
    %cst_8 = arith.constant 3.200000e+01 : f32
    %13 = vector.broadcast %cst_8 : f32 to vector<8x1xf32>
    %14 = arith.divf %12, %13 : vector<8x1xf32>
    %15 = vector.broadcast %7 : vector<8x1xf32> to vector<8x32xf32>
    %16 = arith.subf %1, %15 : vector<8x32xf32>
    %cst_9 = arith.constant 9.99999997E-7 : f32
    %17 = vector.broadcast %cst_9 : f32 to vector<8x1xf32>
    %18 = arith.addf %14, %17 : vector<8x1xf32>
    %19 = math.rsqrt %18 : vector<8x1xf32>
    %20 = vector.broadcast %19 : vector<8x1xf32> to vector<8x32xf32>
    %21 = arith.mulf %16, %20 : vector<8x32xf32>
    %22 = vector.broadcast %2 : vector<1x32xf32> to vector<8x32xf32>
    %23 = arith.mulf %21, %22 : vector<8x32xf32>
    %24 = vector.broadcast %3 : vector<1x32xf32> to vector<8x32xf32>
    %25 = arith.addf %23, %24 : vector<8x32xf32>
    %26 = arith.truncf %25 : vector<8x32xf32> to vector<8x32xbf16>
    %c0_10 = arith.constant 0 : index
    %c0_11 = arith.constant 0 : index
    %27 = vector.load %arg5[%c0_10, %c0_11] : memref<32x96xbf16, #tpu.memory_space<vmem>>, vector<32x96xbf16>
    %cst_12 = arith.constant dense<0.000000e+00> : vector<8x96xf32>
    %28 = tpu.matmul %26, %27, %cst_12 {dimension_numbers = #tpu.dot_dimension_numbers<[1], [0], [0], [1], [0, 0, 1, 1], [], []>} : vector<8x32xbf16>, vector<32x96xbf16>, vector<8x96xf32> -> vector<8x96xf32>
    %c0_13 = arith.constant 0 : index
    %c0_14 = arith.constant 0 : index
    %29 = vector.load %arg6[%c0_13, %c0_14] : memref<1x96xf32, #tpu.memory_space<vmem>>, vector<1x96xf32>
    %30 = vector.broadcast %29 : vector<1x96xf32> to vector<8x96xf32>
    %31 = arith.addf %28, %30 : vector<8x96xf32>
    %32 = vector.extract_strided_slice %31 {offsets = [0, 0], sizes = [8, 8], strides = [1, 1]} : vector<8x96xf32> to vector<8x8xf32>
    %cst_15 = arith.constant 0.353553385 : f32
    %33 = vector.broadcast %cst_15 : f32 to vector<8x8xf32>
    %34 = arith.mulf %32, %33 : vector<8x8xf32>
    %35 = arith.truncf %34 : vector<8x8xf32> to vector<8x8xbf16>
    %c0_16 = arith.constant 0 : index
    %c0_17 = arith.constant 0 : index
    %c0_18 = arith.constant 0 : index
    %c0_19 = arith.constant 0 : index
    %36 = vector.load %arg7[%c0_16, %c0_17, %c0_18, %c0_19] : memref<1x4x8x8xbf16, #tpu.memory_space<vmem>>, vector<1x1x8x8xbf16>
    %37 = vector.shape_cast %36 : vector<1x1x8x8xbf16> to vector<8x8xbf16>
    %38 = vector.shape_cast %35 : vector<8x8xbf16> to vector<1x1x8x8xbf16>
    tpu.vector_store %arg7[%c0_16, %c0_17, %c0_18, %c0_19], %38 {strides = array<i32>} : memref<1x4x8x8xbf16, #tpu.memory_space<vmem>>, vector<1x1x8x8xbf16>,
    %39 = vector.extract_strided_slice %31 {offsets = [0, 32], sizes = [8, 8], strides = [1, 1]} : vector<8x96xf32> to vector<8x8xf32>
    %40 = arith.truncf %39 : vector<8x8xf32> to vector<8x8xbf16>
    %c0_20 = arith.constant 0 : index
    %c0_21 = arith.constant 0 : index
    %c0_22 = arith.constant 0 : index
    %c0_23 = arith.constant 0 : index
    %41 = vector.load %arg8[%c0_20, %c0_21, %c0_22, %c0_23] : memref<1x4x8x8xbf16, #tpu.memory_space<vmem>>, vector<1x1x8x8xbf16>
    %42 = vector.shape_cast %41 : vector<1x1x8x8xbf16> to vector<8x8xbf16>
    %43 = vector.shape_cast %40 : vector<8x8xbf16> to vector<1x1x8x8xbf16>
    tpu.vector_store %arg8[%c0_20, %c0_21, %c0_22, %c0_23], %43 {strides = array<i32>} : memref<1x4x8x8xbf16, #tpu.memory_space<vmem>>, vector<1x1x8x8xbf16>,
    %44 = vector.extract_strided_slice %31 {offsets = [0, 64], sizes = [8, 8], strides = [1, 1]} : vector<8x96xf32> to vector<8x8xf32>
    %45 = arith.truncf %44 : vector<8x8xf32> to vector<8x8xbf16>
    %c0_24 = arith.constant 0 : index
    %c0_25 = arith.constant 0 : index
    %c0_26 = arith.constant 0 : index
    %c0_27 = arith.constant 0 : index
    %46 = vector.load %arg9[%c0_24, %c0_25, %c0_26, %c0_27] : memref<1x4x8x8xbf16, #tpu.memory_space<vmem>>, vector<1x1x8x8xbf16>
    %47 = vector.shape_cast %46 : vector<1x1x8x8xbf16> to vector<8x8xbf16>
    %48 = vector.shape_cast %45 : vector<8x8xbf16> to vector<1x1x8x8xbf16>
    tpu.vector_store %arg9[%c0_24, %c0_25, %c0_26, %c0_27], %48 {strides = array<i32>} : memref<1x4x8x8xbf16, #tpu.memory_space<vmem>>, vector<1x1x8x8xbf16>,
    %49 = vector.extract_strided_slice %31 {offsets = [0, 8], sizes = [8, 8], strides = [1, 1]} : vector<8x96xf32> to vector<8x8xf32>
    %cst_28 = arith.constant 0.353553385 : f32
    %50 = vector.broadcast %cst_28 : f32 to vector<8x8xf32>
    %51 = arith.mulf %49, %50 : vector<8x8xf32>
    %52 = arith.truncf %51 : vector<8x8xf32> to vector<8x8xbf16>
    %c0_29 = arith.constant 0 : index
    %c1 = arith.constant 1 : index
    %c0_30 = arith.constant 0 : index
    %c0_31 = arith.constant 0 : index
    %53 = vector.load %arg7[%c0_29, %c1, %c0_30, %c0_31] : memref<1x4x8x8xbf16, #tpu.memory_space<vmem>>, vector<1x1x8x8xbf16>
    %54 = vector.shape_cast %53 : vector<1x1x8x8xbf16> to vector<8x8xbf16>
    %55 = vector.shape_cast %52 : vector<8x8xbf16> to vector<1x1x8x8xbf16>
    tpu.vector_store %arg7[%c0_29, %c1, %c0_30, %c0_31], %55 {strides = array<i32>} : memref<1x4x8x8xbf16, #tpu.memory_space<vmem>>, vector<1x1x8x8xbf16>,
    %56 = vector.extract_strided_slice %31 {offsets = [0, 40], sizes = [8, 8], strides = [1, 1]} : vector<8x96xf32> to vector<8x8xf32>
    %57 = arith.truncf %56 : vector<8x8xf32> to vector<8x8xbf16>
    %c0_32 = arith.constant 0 : index
    %c1_33 = arith.constant 1 : index
    %c0_34 = arith.constant 0 : index
    %c0_35 = arith.constant 0 : index
    %58 = vector.load %arg8[%c0_32, %c1_33, %c0_34, %c0_35] : memref<1x4x8x8xbf16, #tpu.memory_space<vmem>>, vector<1x1x8x8xbf16>
    %59 = vector.shape_cast %58 : vector<1x1x8x8xbf16> to vector<8x8xbf16>
    %60 = vector.shape_cast %57 : vector<8x8xbf16> to vector<1x1x8x8xbf16>
    tpu.vector_store %arg8[%c0_32, %c1_33, %c0_34, %c0_35], %60 {strides = array<i32>} : memref<1x4x8x8xbf16, #tpu.memory_space<vmem>>, vector<1x1x8x8xbf16>,
    %61 = vector.extract_strided_slice %31 {offsets = [0, 72], sizes = [8, 8], strides = [1, 1]} : vector<8x96xf32> to vector<8x8xf32>
    %62 = arith.truncf %61 : vector<8x8xf32> to vector<8x8xbf16>
    %c0_36 = arith.constant 0 : index
    %c1_37 = arith.constant 1 : index
    %c0_38 = arith.constant 0 : index
    %c0_39 = arith.constant 0 : index
    %63 = vector.load %arg9[%c0_36, %c1_37, %c0_38, %c0_39] : memref<1x4x8x8xbf16, #tpu.memory_space<vmem>>, vector<1x1x8x8xbf16>
    %64 = vector.shape_cast %63 : vector<1x1x8x8xbf16> to vector<8x8xbf16>
    %65 = vector.shape_cast %62 : vector<8x8xbf16> to vector<1x1x8x8xbf16>
    tpu.vector_store %arg9[%c0_36, %c1_37, %c0_38, %c0_39], %65 {strides = array<i32>} : memref<1x4x8x8xbf16, #tpu.memory_space<vmem>>, vector<1x1x8x8xbf16>,
    %66 = vector.extract_strided_slice %31 {offsets = [0, 16], sizes = [8, 8], strides = [1, 1]} : vector<8x96xf32> to vector<8x8xf32>
    %cst_40 = arith.constant 0.353553385 : f32
    %67 = vector.broadcast %cst_40 : f32 to vector<8x8xf32>
    %68 = arith.mulf %66, %67 : vector<8x8xf32>
    %69 = arith.truncf %68 : vector<8x8xf32> to vector<8x8xbf16>
    %c0_41 = arith.constant 0 : index
    %c2 = arith.constant 2 : index
    %c0_42 = arith.constant 0 : index
    %c0_43 = arith.constant 0 : index
    %70 = vector.load %arg7[%c0_41, %c2, %c0_42, %c0_43] : memref<1x4x8x8xbf16, #tpu.memory_space<vmem>>, vector<1x1x8x8xbf16>
    %71 = vector.shape_cast %70 : vector<1x1x8x8xbf16> to vector<8x8xbf16>
    %72 = vector.shape_cast %69 : vector<8x8xbf16> to vector<1x1x8x8xbf16>
    tpu.vector_store %arg7[%c0_41, %c2, %c0_42, %c0_43], %72 {strides = array<i32>} : memref<1x4x8x8xbf16, #tpu.memory_space<vmem>>, vector<1x1x8x8xbf16>,
    %73 = vector.extract_strided_slice %31 {offsets = [0, 48], sizes = [8, 8], strides = [1, 1]} : vector<8x96xf32> to vector<8x8xf32>
    %74 = arith.truncf %73 : vector<8x8xf32> to vector<8x8xbf16>
    %c0_44 = arith.constant 0 : index
    %c2_45 = arith.constant 2 : index
    %c0_46 = arith.constant 0 : index
    %c0_47 = arith.constant 0 : index
    %75 = vector.load %arg8[%c0_44, %c2_45, %c0_46, %c0_47] : memref<1x4x8x8xbf16, #tpu.memory_space<vmem>>, vector<1x1x8x8xbf16>
    %76 = vector.shape_cast %75 : vector<1x1x8x8xbf16> to vector<8x8xbf16>
    %77 = vector.shape_cast %74 : vector<8x8xbf16> to vector<1x1x8x8xbf16>
    tpu.vector_store %arg8[%c0_44, %c2_45, %c0_46, %c0_47], %77 {strides = array<i32>} : memref<1x4x8x8xbf16, #tpu.memory_space<vmem>>, vector<1x1x8x8xbf16>,
    %78 = vector.extract_strided_slice %31 {offsets = [0, 80], sizes = [8, 8], strides = [1, 1]} : vector<8x96xf32> to vector<8x8xf32>
    %79 = arith.truncf %78 : vector<8x8xf32> to vector<8x8xbf16>
    %c0_48 = arith.constant 0 : index
    %c2_49 = arith.constant 2 : index
    %c0_50 = arith.constant 0 : index
    %c0_51 = arith.constant 0 : index
    %80 = vector.load %arg9[%c0_48, %c2_49, %c0_50, %c0_51] : memref<1x4x8x8xbf16, #tpu.memory_space<vmem>>, vector<1x1x8x8xbf16>
    %81 = vector.shape_cast %80 : vector<1x1x8x8xbf16> to vector<8x8xbf16>
    %82 = vector.shape_cast %79 : vector<8x8xbf16> to vector<1x1x8x8xbf16>
    tpu.vector_store %arg9[%c0_48, %c2_49, %c0_50, %c0_51], %82 {strides = array<i32>} : memref<1x4x8x8xbf16, #tpu.memory_space<vmem>>, vector<1x1x8x8xbf16>,
    %83 = vector.extract_strided_slice %31 {offsets = [0, 24], sizes = [8, 8], strides = [1, 1]} : vector<8x96xf32> to vector<8x8xf32>
    %cst_52 = arith.constant 0.353553385 : f32
    %84 = vector.broadcast %cst_52 : f32 to vector<8x8xf32>
    %85 = arith.mulf %83, %84 : vector<8x8xf32>
    %86 = arith.truncf %85 : vector<8x8xf32> to vector<8x8xbf16>
    %c0_53 = arith.constant 0 : index
    %c3 = arith.constant 3 : index
    %c0_54 = arith.constant 0 : index
    %c0_55 = arith.constant 0 : index
    %87 = vector.load %arg7[%c0_53, %c3, %c0_54, %c0_55] : memref<1x4x8x8xbf16, #tpu.memory_space<vmem>>, vector<1x1x8x8xbf16>
    %88 = vector.shape_cast %87 : vector<1x1x8x8xbf16> to vector<8x8xbf16>
    %89 = vector.shape_cast %86 : vector<8x8xbf16> to vector<1x1x8x8xbf16>
    tpu.vector_store %arg7[%c0_53, %c3, %c0_54, %c0_55], %89 {strides = array<i32>} : memref<1x4x8x8xbf16, #tpu.memory_space<vmem>>, vector<1x1x8x8xbf16>,
    %90 = vector.extract_strided_slice %31 {offsets = [0, 56], sizes = [8, 8], strides = [1, 1]} : vector<8x96xf32> to vector<8x8xf32>
    %91 = arith.truncf %90 : vector<8x8xf32> to vector<8x8xbf16>
    %c0_56 = arith.constant 0 : index
    %c3_57 = arith.constant 3 : index
    %c0_58 = arith.constant 0 : index
    %c0_59 = arith.constant 0 : index
    %92 = vector.load %arg8[%c0_56, %c3_57, %c0_58, %c0_59] : memref<1x4x8x8xbf16, #tpu.memory_space<vmem>>, vector<1x1x8x8xbf16>
    %93 = vector.shape_cast %92 : vector<1x1x8x8xbf16> to vector<8x8xbf16>
    %94 = vector.shape_cast %91 : vector<8x8xbf16> to vector<1x1x8x8xbf16>
    tpu.vector_store %arg8[%c0_56, %c3_57, %c0_58, %c0_59], %94 {strides = array<i32>} : memref<1x4x8x8xbf16, #tpu.memory_space<vmem>>, vector<1x1x8x8xbf16>,
    %95 = vector.extract_strided_slice %31 {offsets = [0, 88], sizes = [8, 8], strides = [1, 1]} : vector<8x96xf32> to vector<8x8xf32>
    %96 = arith.truncf %95 : vector<8x8xf32> to vector<8x8xbf16>
    %c0_60 = arith.constant 0 : index
    %c3_61 = arith.constant 3 : index
    %c0_62 = arith.constant 0 : index
    %c0_63 = arith.constant 0 : index
    %97 = vector.load %arg9[%c0_60, %c3_61, %c0_62, %c0_63] : memref<1x4x8x8xbf16, #tpu.memory_space<vmem>>, vector<1x1x8x8xbf16>
    %98 = vector.shape_cast %97 : vector<1x1x8x8xbf16> to vector<8x8xbf16>
    %99 = vector.shape_cast %96 : vector<8x8xbf16> to vector<1x1x8x8xbf16>
    tpu.vector_store %arg9[%c0_60, %c3_61, %c0_62, %c0_63], %99 {strides = array<i32>} : memref<1x4x8x8xbf16, #tpu.memory_space<vmem>>, vector<1x1x8x8xbf16>,
    return
  }
  func.func @transform_0(%arg0: i32, %arg1: i32) -> (i32, i32, i32) {
    %c0_i32 = arith.constant 0 : i32
    %c0_i32_0 = arith.constant 0 : i32
    return %arg0, %arg1, %c0_i32 : i32, i32, i32
  }
  func.func @transform_1(%arg0: i32, %arg1: i32) -> (i32, i32) {
    %c0_i32 = arith.constant 0 : i32
    %c0_i32_0 = arith.constant 0 : i32
    %c0_i32_1 = arith.constant 0 : i32
    return %c0_i32, %c0_i32_0 : i32, i32
  }
  func.func @transform_2(%arg0: i32, %arg1: i32) -> (i32, i32) {
    %c0_i32 = arith.constant 0 : i32
    %c0_i32_0 = arith.constant 0 : i32
    %c0_i32_1 = arith.constant 0 : i32
    return %c0_i32, %c0_i32_0 : i32, i32
  }
  func.func @transform_3(%arg0: i32, %arg1: i32) -> (i32, i32) {
    %c0_i32 = arith.constant 0 : i32
    %c0_i32_0 = arith.constant 0 : i32
    %c0_i32_1 = arith.constant 0 : i32
    return %c0_i32, %c0_i32_0 : i32, i32
  }
  func.func @transform_4(%arg0: i32, %arg1: i32) -> (i32, i32) {
    %c0_i32 = arith.constant 0 : i32
    %c0_i32_0 = arith.constant 0 : i32
    %c0_i32_1 = arith.constant 0 : i32
    return %c0_i32, %c0_i32_0 : i32, i32
  }
  func.func @transform_5(%arg0: i32, %arg1: i32) -> (i32, i32, i32, i32) {
    %c0_i32 = arith.constant 0 : i32
    %c0_i32_0 = arith.constant 0 : i32
    %c0_i32_1 = arith.constant 0 : i32
    return %arg0, %c0_i32, %arg1, %c0_i32_0 : i32, i32, i32, i32
  }
  func.func @transform_6(%arg0: i32, %arg1: i32) -> (i32, i32, i32, i32) {
    %c0_i32 = arith.constant 0 : i32
    %c0_i32_0 = arith.constant 0 : i32
    %c0_i32_1 = arith.constant 0 : i32
    return %arg0, %c0_i32, %arg1, %c0_i32_0 : i32, i32, i32, i32
  }
  func.func @transform_7(%arg0: i32, %arg1: i32) -> (i32, i32, i32, i32) {
    %c0_i32 = arith.constant 0 : i32
    %c0_i32_0 = arith.constant 0 : i32
    %c0_i32_1 = arith.constant 0 : i32
    return %arg0, %c0_i32, %arg1, %c0_i32_0 : i32, i32, i32, i32
  }
}

</mosaic_0001>

<bundles_post_ra>
// kernel: tpu_custom_call.1
= control target key start
LH: loop header
LB: loop body
LE: loop exit
PB: predicated region body
PF: predicated region fallthrough
CT: control target
= control target key end

     0   :  { %s1752_s0 = inlined_call_operand.hbm [shape: f32[2,8,32], index: 0, kind: input, shape index: {}]   ;;  %s1753_s1 = inlined_call_operand.hbm [shape: f32[1,32], index: 1, kind: input, shape index: {}]   ;;  %s1754_s2 = inlined_call_operand.hbm [shape: f32[1,32], index: 2, kind: input, shape index: {}]   ;;  %s1755_s3 = inlined_call_operand.hbm [shape: bf16[32,96], index: 3, kind: input, shape index: {}]   ;;  %s1756_s4 = inlined_call_operand.hbm [shape: f32[1,96], index: 4, kind: input, shape index: {}]   ;;  %s1757_s5 = inlined_call_operand.hbm [shape: bf16[2,4,8,8], index: 5, kind: output, shape index: {0}]   ;;  %s1758_s6 = inlined_call_operand.hbm [shape: bf16[2,4,8,8], index: 6, kind: output, shape index: {1}]   ;;  %s1759_s7 = inlined_call_operand.hbm [shape: bf16[2,4,8,8], index: 7, kind: output, shape index: {2}]  }
   0x1   :  { %1766 = sst [smem:[#allocation20_spill]] %s1753_s1 }
   0x2   :  { %1767 = sst [smem:[#allocation21_spill]] %s1754_s2 }
   0x3   :  { %13 = vsyncpa [#allocation3], 0 }
   0x4   :  { %15 = vsyncpa [#allocation3 + $0x1], 0 }
   0x5   :  { %16 = vsyncpa [#allocation6], 0 }
   0x6   :  { %17 = vsyncpa [#allocation9], 0 }
   0x7   :  { %18 = vsyncpa [#allocation4], 0 }
   0x8   :  { %20 = vsyncpa [#allocation4 + $0x1], 0 }
   0x9   :  { %21 = vsyncpa [#allocation13], 0 }
   0xa   :  { %23 = vsyncpa [#allocation13 + $0x1], 0  ;;  %s1349_s24 = smov 0   ;;  %s1351_s25 = smov 0  }
   0xb   :  { %s1353_s26 = smov 0   ;;  %s1355_s27 = smov 0  }
   0xc   :  { %s1357_s28 = smov 0   ;;  %s1359_s29 = smov 0  }
   0xd LB: > { %s1380_s30 = sadd.s32 4294967295, %s1283_s29   ;;  %p797_p0 = scmp.ge.s32.totalorder %s1283_s29, 1  ;;  %s1283_s29 = sphi %s1359_s29, %s29_s29   ;;  %s1279_s28 = sphi %s1357_s28, %s1794_s28   ;;  %s1275_s27 = sphi %s1355_s27, %s1793_s27   ;;  %s1271_s26 = sphi %s1353_s26, %s1792_s26   ;;  %s1267_s25 = sphi %s1351_s25, %s1791_s25   ;;  %s1263_s24 = sphi %s1349_s24, %s1790_s24  }
   0xe   : > { %p1760_p1 = scmp.eq.s32.totalorder %s1380_s30, 0  ;;  %p242_p2 = scmp.lt.s32.totalorder %s1283_s29, 3 }
   0xf   : > { %s1285_s9 = smov [#allocation5]   ;;  %s1286_s11 = smov [#allocation8]  }
  0x10   : > { %p1385_p3 = pnand %p797_p0, %p242_p2  ;;  %s255_s10 = sshll.u32 %s1285_s9, 4  ;;  %s256_s10 = int_to_ptr.vmem [resolvable:$true] %s255_s10 }
  0x11   : > { %s276_s12 = sshll.u32 %s1286_s11, 4  ;;  %s1287_s14 = smov [#allocation7]   ;;  %s1398_s12 = int_to_ptr.vmem [resolvable:$true] %s276_s12 }
  0x12   : > { %s1768_s8 = scalar_select %p1385_p3, 1, 0 }
  0x13   : > { %p882_p5 = pneg %p1385_p3  ;;  %s1400_s15 = sshll.u32 %s1287_s14, 4  ;;  %s267_s15 = int_to_ptr.vmem [resolvable:$true] %s1400_s15 }
  0x14   : > { %s1770_s1 = sld [smem:[#allocation20_spill]] }
  0x15   : > { %p1394_p6 = pnand %p882_p5, %p1760_p1 }
  0x17   : > { %p1410_p8 = pneg %p1394_p6 }
  0x1a   : > { %s991_s18 = scalar_lea.hbm %s1770_s1, 16 }
  0x1b   : > { %p992_p7 = scmp.ne.s32.totalorder %s1770_s1, %s991_s18  ;;  %p998_p11 = scmp.lt.u32.totalorder %s991_s18, %s1770_s1 }
  0x1d   : > { %p994_p9 = pnand %p1410_p8, %p992_p7 }
  0x1f   : > { %p995_p10 = pneg %p994_p9 }
  0x21   : > { %p1000_p12 = pnand %p998_p11, %p995_p10 }
  0x23   : > { %1003 = shalt.err (!%p1000_p12)
}
  0x24   : > { %s1004_s9 = scalar_lea.vmem %s256_s10, 16  ;;  %s1011_s11 = scalar_lea.vmem %s256_s10, 32 }
  0x25   : > { %p1005_p13 = scmp.ne.s32.totalorder %s256_s10, %s1004_s9  ;;  %p1012_p5 = scmp.lt.s32.totalorder %s256_s10, %s256_s10 }
  0x26   : > { %p1013_p4 = scmp.lt.s32.totalorder %s1011_s11, %s1004_s9 }
  0x27   : > { %p1007_p0 = pnand %p1005_p13, %p1410_p8 }
  0x28   : > { %p1014_p1 = por %p1013_p4, %p1012_p5 }
  0x29   : > { %p1008_p2 = pneg %p1007_p0 }
  0x2b   : > { %p1015_p3 = pnand %p1014_p1, %p1008_p2 }
  0x2d   : > { %1018 = shalt.err (!%p1015_p3)
}
  0x2e   : > { %885 = dma.hbm_to_vmem [thread:$0]  (!%p1394_p6), %s1770_s1, 16, %s256_s10, [#allocation6]  }
  0x2f   : > { %s1019_s19 = scalar_lea.hbm %s1755_s3, 256 }
  0x30   : > { %p1020_p7 = scmp.ne.s32.totalorder %s1755_s3, %s1019_s19  ;;  %p1026_p1 = scmp.lt.u32.totalorder %s1019_s19, %s1755_s3 }
  0x32   : > { %p1022_p9 = pnand %p1020_p7, %p1410_p8 }
  0x34   : > { %p1023_p4 = pneg %p1022_p9 }
  0x36   : > { %p1028_p3 = pnand %p1026_p1, %p1023_p4 }
  0x38   : > { %1031 = shalt.err (!%p1028_p3)
}
  0x39   : > { %s1032_s10 = scalar_lea.vmem %s1398_s12, 256  ;;  %p1040_p13 = scmp.lt.s32.totalorder %s1398_s12, %s1398_s12 }
  0x3a   : > { %p1033_p10 = scmp.ne.s32.totalorder %s1398_s12, %s1032_s10  ;;  %p1041_p0 = scmp.lt.s32.totalorder %s1032_s10, %s1032_s10 }
  0x3c   : > { %p1035_p11 = pnand %p1033_p10, %p1410_p8  ;;  %p1042_p2 = por %p1041_p0, %p1040_p13 }
  0x3e   : > { %p1036_p12 = pneg %p1035_p11 }
  0x40   : > { %p1043_p5 = pnand %p1042_p2, %p1036_p12 }
  0x42   : > { %1046 = shalt.err (!%p1043_p5)
}
  0x43   : > { %s1288_s11 = smov 64   ;;  %s1289_s14 = smov 4  }
  0x44   : > { %891 = dma.hbm_to_vmem [thread:$0]  (!%p1394_p6), %s1755_s3, 256, %s1398_s12, [#allocation9], %s1288_s11, %s1288_s11, %s1289_s14  }
  0x45   : > { %s1772_s2 = sld [smem:[#allocation21_spill]] }
  0x4b   : > { %s1047_s20 = scalar_lea.hbm %s1772_s2, 16 }
  0x4c   : > { %p1048_p7 = scmp.ne.s32.totalorder %s1772_s2, %s1047_s20  ;;  %p1054_p1 = scmp.lt.u32.totalorder %s1047_s20, %s1772_s2 }
  0x4e   : > { %p1050_p9 = pnand %p1048_p7, %p1410_p8 }
  0x50   : > { %p1051_p4 = pneg %p1050_p9 }
  0x52   : > { %p1056_p3 = pnand %p1054_p1, %p1051_p4 }
  0x54   : > { %1059 = shalt.err (!%p1056_p3)
}
  0x55   : > { %s1060_s16 = scalar_lea.vmem %s267_s15, 16  ;;  %s1067_s12 = scalar_lea.vmem %s267_s15, 32 }
  0x56   : > { %p1061_p10 = scmp.ne.s32.totalorder %s267_s15, %s1060_s16  ;;  %p1068_p13 = scmp.lt.s32.totalorder %s267_s15, %s267_s15 }
  0x57   : > { %p1069_p0 = scmp.lt.s32.totalorder %s1067_s12, %s1060_s16 }
  0x58   : > { %p1063_p11 = pnand %p1061_p10, %p1410_p8 }
  0x59   : > { %p1070_p2 = por %p1069_p0, %p1068_p13 }
  0x5a   : > { %p1064_p12 = pneg %p1063_p11 }
  0x5c   : > { %p1071_p5 = pnand %p1070_p2, %p1064_p12 }
  0x5e   : > { %1074 = shalt.err (!%p1071_p5)
}
  0x5f   : > { %888 = dma.hbm_to_vmem [thread:$0]  (!%p1394_p6), %s1772_s2, 16, %s267_s15, [#allocation6]  }
  0x60   : > { %s1290_s17 = smov [#allocation10]   ;;  %s1075_s22 = scalar_lea.hbm %s1756_s4, 16 }
  0x61   : > { %s290_s18 = sshll.u32 %s1290_s17, 4  ;;  %p1076_p7 = scmp.ne.s32.totalorder %s1756_s4, %s1075_s22  ;;  %s291_s18 = int_to_ptr.vmem [resolvable:$true] %s290_s18 }
  0x62   : > { %p1082_p1 = scmp.lt.u32.totalorder %s1075_s22, %s1756_s4 }
  0x63   : > { %p1078_p9 = pnand %p1076_p7, %p1410_p8 }
  0x65   : > { %p1079_p4 = pneg %p1078_p9 }
  0x67   : > { %p1084_p3 = pnand %p1082_p1, %p1079_p4 }
  0x69   : > { %1087 = shalt.err (!%p1084_p3)
}
  0x6a   : > { %s1088_s15 = scalar_lea.vmem %s291_s18, 16  ;;  %s1095_s12 = scalar_lea.vmem %s291_s18, 32 }
  0x6b   : > { %p1089_p10 = scmp.ne.s32.totalorder %s291_s18, %s1088_s15  ;;  %p1096_p13 = scmp.lt.s32.totalorder %s291_s18, %s291_s18 }
  0x6c   : > { %p1097_p0 = scmp.lt.s32.totalorder %s1095_s12, %s1088_s15 }
  0x6d   : > { %p1091_p11 = pnand %p1089_p10, %p1410_p8 }
  0x6e   : > { %p1098_p2 = por %p1097_p0, %p1096_p13 }
  0x6f   : > { %p1092_p12 = pneg %p1091_p11 }
  0x71   : > { %p1099_p5 = pnand %p1098_p2, %p1092_p12 }
  0x73   : > { %1102 = shalt.err (!%p1099_p5)
}
  0x74   : > { %894 = dma.hbm_to_vmem [thread:$0]  (!%p1394_p6), %s1756_s4, 16, %s291_s18, [#allocation9]  }
  0x75   : > { %s1762_s21 = sadd.s32 4294967294, %s1283_s29   ;;  %s41_s17 = sadd.s32 1, %s1279_s28 }
  0x76   : > { %p43_p8 = scmp.ge.s32.totalorder %s41_s17, 2  ;;  %s50_s13 = sadd.s32 1, %s1271_s26 }
  0x77   : > { %p57_p7 = scmp.ne.s32.totalorder %s1271_s26, %s1267_s25  ;;  %p58_p9 = scmp.eq.s32.totalorder %s1283_s29, 0 }
  0x78   : > { %s1796_s17 = smov (%p43_p8, %s41_s17), 0  ;;  %p63_p1 = scmp.ne.s32.totalorder %s1267_s25, %s1263_s24 }
  0x79   : > { %p1494_p4 = por %p58_p9, %p57_p7  ;;  %s45_s18 = ssub.s32 %s1279_s28, %s1796_s17 }
  0x7a   : > { %p173_p6 = scmp.eq.s32.totalorder %s1380_s30, 1  ;;  %p48_p3 = scmp.eq.s32.totalorder %s45_s18, 0 }
  0x7b   : > { %p1774_p10 = scmp.eq.s32.totalorder %s1380_s30, 0  ;;  %p179_p13 = scmp.eq.s32.totalorder %s1762_s21, 1 }
  0x7c   : > { %p1509_p12 = por %p173_p6, %p57_p7  ;;  %p913_p2 = scmp.lt.s32.totalorder %s1283_s29, 2 }
  0x7d   : > { %p1505_p11 = por %p1774_p10, %p63_p1  ;;  %p1518_p0 = por %p179_p13, %p63_p1 }
  0x7e   : > { %s1776_s22 = scalar_select %p1509_p12, 1, 0 }
  0x7f   : > { %s1516_s23 = scalar_select %p48_p3, %s1271_s26, %s50_s13  }
  0x80   : > { %s1777_s9 = scalar_select %p1518_p0, 1, 0 }
  0x81   : > { %s301_s10 = sand.u32 1, %s1271_s26   ;;  %s804_s16 = sshll.u32 %s1279_s28, 7 }
  0x82   : > { %s803_s15 = sshll.u32 %s301_s10, 3  ;;  %s1528_s14 = scalar_lea.hbm %s1752_s0, %s804_s16 }
  0x83   : > { %s305_s18 = scalar_lea.vmem [#allocation2], %s803_s15  ;;  %p1532_p5 = pnand %p913_p2, %p1494_p4 }
  0x84   : > { %s313_s13 = sshll.u32 %s305_s18, 4  ;;  %s302_s1 = scalar_lea.sflag [#allocation3], %s301_s10  ;;  %s1536_s13 = int_to_ptr.vmem [resolvable:$true] %s313_s13 }
  0x85   : > { %s1103_s2 = scalar_lea.hbm %s1528_s14, 128  ;;  %p1105_p7 = pneg %p1532_p5 }
  0x86   : > { %p1104_p8 = scmp.ne.s32.totalorder %s1528_s14, %s1103_s2  ;;  %s1108_s19 = scalar_lea.hbm %s1752_s0, 256 }
  0x87   : > { %p1109_p4 = scmp.lt.u32.totalorder %s1528_s14, %s1752_s0  ;;  %p1110_p6 = scmp.lt.u32.totalorder %s1108_s19, %s1103_s2 }
  0x88   : > { %p1106_p9 = pnand %p1105_p7, %p1104_p8  ;;  %p1112_p10 = scmp.lt.u32.totalorder %s1103_s2, %s1528_s14 }
  0x89   : > { %p1111_p3 = por %p1110_p6, %p1109_p4 }
  0x8a   : > { %p1107_p1 = pneg %p1106_p9 }
  0x8b   : > { %p1113_p13 = por %p1112_p10, %p1111_p3 }
  0x8d   : > { %p1114_p2 = pnand %p1113_p13, %p1107_p1 }
  0x8f   : > { %1117 = shalt.err (!%p1114_p2)
}
  0x90   : > { %s1118_s10 = scalar_lea.vmem %s1536_s13, 128  ;;  %s1291_s18 = smov [#allocation2]  }
  0x91   : > { %p1119_p8 = scmp.ne.s32.totalorder %s1536_s13, %s1118_s10  ;;  %s1123_s16 = sshll.u32 %s1291_s18, 4  ;;  %s1124_s16 = int_to_ptr.vmem [resolvable:$false] %s1123_s16 }
  0x92   : > { %s1125_s15 = scalar_lea.vmem %s1124_s16, 256  ;;  %p1126_p12 = scmp.lt.s32.totalorder %s1536_s13, %s1124_s16 }
  0x93   : > { %p1121_p9 = pnand %p1119_p8, %p1105_p7  ;;  %p1127_p4 = scmp.lt.s32.totalorder %s1125_s15, %s1118_s10 }
  0x95   : > { %p1122_p0 = pneg %p1121_p9  ;;  %p1128_p6 = por %p1127_p4, %p1126_p12 }
  0x97   : > { %p1129_p3 = pnand %p1128_p6, %p1122_p0 }
  0x99   : > { %1132 = shalt.err (!%p1129_p3)
}
  0x9a   : > { %898 = dma.hbm_to_vmem [thread:$0]  (!%p1532_p5), %s1528_s14, 128, %s1536_s13, %s302_s1  }
  0x9b   : > { %p1779_p1 = scmp.ne.s32.totalorder %s1768_s8, 0 }
  0x9c   : > { %s1566_s2 = sand.u32 (!%p1779_p1), 1, %s1267_s25  }
  0x9d   : > { %322 = sbr.rel (%p1779_p1) target bundleno = 895 (0x37f), region = 40  ;;  %s806_s19 = sshll.u32 (!%p1779_p1), %s1566_s2, 3 }
  0x9e   : > { %s325_s12 = scalar_lea.sflag (!%p1779_p1), [#allocation3], %s1566_s2  ;;  %s328_s11 = scalar_lea.vmem (!%p1779_p1), [#allocation2], %s806_s19 }
  0xa4   : > { %1242 = dma.done.wait (%p1505_p11), %s325_s12, 128  }
  0xa5   : > { %1244 = vsyncadd (%p1505_p11), %s325_s12, 4294967168  ;;  %p1780_p12 = scmp.eq.s32.totalorder %s1380_s30, 0 }
  0xa7   : > { %1246 = dma.done.wait (%p1780_p12), [#allocation6], 32   ;;  %p1781_p0 = pmov %p1780_p12 }
  0xa9   : > { %1248 = vsyncadd (%p1781_p0), [#allocation6], 4294967264  ;;  %p1782_p5 = pmov %p1781_p0 }
  0xaa   : > { %p1783_p7 = pmov %p1781_p0 }
  0xab   : > { %1250 = dma.done.wait (%p1782_p5), [#allocation9], 272  }
  0xac   : > { %1252 = vsyncadd (%p1783_p7), [#allocation9], 4294967024  ;;  %vm389_vm0 = vcmask 261120   ;;  %v386_v0 = vld [vmem:[%s328_s11] sm:$0xff]  ;;  %v987_v7 = vld [vmem:[#allocation8] sm:$0xff]   ;;  %v1292_v8 = vmov 0.0  }
  0xad   : > { %v390_v1 = vsel %vm389_vm0, %v386_v0, 0.0  ;;  %850 = vmatprep.subr.bf16.mxu0 %v1292_v8  ;;  %vm1293_vm1 = vmmov 0   ;;  %v988_v9 = vld [vmem:[#allocation8 + $0x8] sm:$0xff]   ;;  %v814_v14 = vld [vmem:[#allocation5] ss:$0 sm:$0xff]  ;;  %s1586_s1 = sshll.u32 %s1566_s2, 4 }
  0xae   : > { %391 = vadd.xlane.f32.xlu0 %v390_v1  ;;  %854 = vmatprep.mubr.msk.bf16.mxu0 %vm1293_vm1, %v1292_v8  ;;  %v815_v16 = vld [vmem:[#allocation7] ss:$0 sm:$0xff]  ;;  %v816_v20 = vld [vmem:[#allocation10] ss:$0 sm:$0xff]  ;;  %vm487_vm2 = vcmask 60416   ;;  %s1294_s8 = smov 80  }
  0xaf   : > { %851 = vmatpush3.bf16.msra.mxu0 %v987_v7  ;;  %s1295_s21 = smov 96   ;;  %s1589_s20 = scalar_lea.vmem [#allocation11], %s1586_s1 }
  0xb0   : > { %852 = vmatprep.subr.bf16.mxu0 %v1292_v8  ;;  %s1296_s14 = smov 88   ;;  %s1297_s13 = smov 104  }
  0xb1   : > { %s1298_s10 = smov 72   ;;  %s1764_s18 = smov 64  }
  0xb2   : > { %s1300_s16 = smov 56   ;;  %s1301_s15 = smov 48  }
  0xb3   : > { %853 = vmatpush3.bf16.msra.mxu0 %v988_v9  ;;  %s1302_s19 = smov 120   ;;  %s1303_s12 = smov 112  }
  0xb4   : > { %s1304_s11 = smov 40   ;;  %p1784_p10 = scmp.ne.s32.totalorder %s1776_s22, 0 }
 0x13b   : > { %v392_v2 = vpop.xlane.xlu0 %391 }
 0x13c   : > { %v394_v3 = vmul.f32 0.03125, %v392_v2 }
 0x13e   : > { %v395_v4 = vsub.f32 %v386_v0, %v394_v3 }
 0x140   : > { %v396_v5 = vmul.f32 %v395_v4, %v395_v4 }
 0x142   : > { %v397_v6 = vsel %vm389_vm0, %v396_v5, 0.0 }
 0x143   : > { %398 = vadd.xlane.f32.xlu0 %v397_v6 }
 0x1d0   : > { %v399_v10 = vpop.xlane.xlu0 %398 }
 0x1d1   : > { %v400_v11 = vmul.f32 0.03125, %v399_v10 }
 0x1d3   : > { %v401_v12 = vadd.f32 1e-06, %v400_v11 }
 0x1d5   : > { %989 = vrsqrt.f32 %v401_v12 }
 0x1df   : > { %v990_v13 = vpop.eup %989 }
 0x1e0   : > { %v403_v15 = vmul.f32 %v990_v13, %v395_v4 }
 0x1e2   : > { %v410_v17 = vmul.f32 %v814_v14, %v403_v15 }
 0x1e4   : > { %v417_v18 = vadd.f32 %v815_v16, %v410_v17 }
 0x1e6   : > { %v418_v19 = vpack.c.bf16 %v417_v18, %v417_v18 }
 0x1e8   : > { %855 = vmatmul.mubr.msk.bf16.vlgmr.msra.gmra.mrb[0].mxu0 %vm389_vm0, %v418_v19 }
 0x2bb   : > { %v479_v21 = vpop.f32.mrb[0].mxu0 }
 0x2bc   : > { %v480_v22 = vadd.f32 %v816_v20, %v479_v21  ;;  %v856_v23 = vpop.f32.mrb[1].mxu0 }
 0x2bd   : > { %v482_v24 = vpop.f32.mrb[2].mxu0 }
 0x2be   : > { %v485_v25 = vmul.f32 0.35355338, %v480_v22  ;;  %v842_v26 = vpack.c.bf16 %v480_v22, %v480_v22  ;;  %v857_v27 = vpop.f32.mrb[3].mxu0 }
 0x2c0   : > { %v486_v28 = vpack.c.bf16 %v485_v25, %v485_v25  ;;  %524 = vrot.lane.b32.xlu0 %v842_v26, %s1294_s8  ;;  %493 = vrot.lane.b32.xlu1 %v842_v26, %s1295_s21  ;;  %s377_s8 = scalar_lea.vmem [#allocation12], %s1586_s1 }
 0x2c1   : > { %s591_s21 = sshll.u32 %s377_s8, 4  ;;  %s1604_s21 = int_to_ptr.vmem [resolvable:$true] %s591_s21 }
 0x2c2   : > { %488 = vst.msk [vmem:[%s1589_s20] sm:$0xf] %vm487_vm2, %v486_v28 }
 0x2c4   : > { %509 = vrot.lane.b32.xlu1 %v842_v26, %s1296_s14  ;;  %534 = vrot.lane.b32.xlu0 %v486_v28, %s1297_s13  ;;  %s554_s14 = sand.u32 1, %s1380_s30   ;;  %s1599_s13 = sshll.u32 %s1275_s27, 8 }
 0x2c5   : > { %s1613_s27 = scalar_lea.sflag [#allocation13], %s554_s14  ;;  %s1133_s30 = scalar_lea.vmem %s1604_s21, 256 }
 0x2c6   : > { %p1134_p11 = scmp.ne.s32.totalorder %s1604_s21, %s1133_s30 }
 0x2c8   : > { %539 = vrot.lane.b32.xlu1 %v842_v26, %s1298_s10  ;;  %p1135_p13 = pnand %p1134_p11, %p1784_p10 }
 0x2ca   : > { %p1136_p2 = pneg %p1135_p13 }
 0x2cc   : > { %497 = vrot.lane.b32.xlu1 %v842_v26, %s1764_s18 }
 0x2d0   : > { %514 = vrot.lane.b32.xlu1 %v842_v26, %s1300_s16 }
 0x2d4   : > { %529 = vrot.lane.b32.xlu1 %v842_v26, %s1301_s15  ;;  %s1610_s15 = scalar_lea.hbm %s1758_s6, %s1599_s13 }
 0x2d8   : > { %504 = vrot.lane.b32.xlu1 %v486_v28, %s1302_s19  ;;  %s1305_s19 = smov [#allocation12]  }
 0x2dc   : > { %519 = vrot.lane.b32.xlu1 %v486_v28, %s1303_s12  ;;  %s1137_s12 = sshll.u32 %s1305_s19, 4  ;;  %s1138_s12 = int_to_ptr.vmem [resolvable:$false] %s1137_s12 }
 0x2dd   : > { %p1140_p8 = scmp.lt.s32.totalorder %s1604_s21, %s1138_s12 }
 0x2e0   : > { %544 = vrot.lane.b32.xlu1 %v842_v26, %s1304_s11  ;;  %s1139_s11 = scalar_lea.vmem %s1138_s12, 512 }
 0x2e1   : > { %p1141_p9 = scmp.lt.s32.totalorder %s1139_s11, %s1133_s30 }
 0x2e3   : > { %p1142_p4 = por %p1141_p9, %p1140_p8 }
 0x2e5   : > { %p1143_p6 = pnand %p1142_p4, %p1136_p2 }
 0x332   : > { %v525_v29 = vpop.permute.xlu0 %524  ;;  %v494_v30 = vpop.permute.xlu1 %493 }
 0x333   : > { %826 = vst.msk [vmem:[%s377_s8 + $0x8] sm:$0xf] %vm487_vm2, %v525_v29  ;;  %496 = vst.msk [vmem:[%s377_s8] sm:$0xf] %vm487_vm2, %v494_v30 }
 0x336   : > { %v510_v31 = vpop.permute.xlu1 %509  ;;  %v535_v32 = vpop.permute.xlu0 %534 }
 0x337   : > { %823 = vst.msk [vmem:[%s377_s8 + $0x4] sm:$0xf] %vm487_vm2, %v510_v31  ;;  %828 = vst.msk [vmem:[%s1589_s20 + $0xc] sm:$0xf] %vm487_vm2, %v535_v32 }
 0x33a   : > { %v540_v33 = vpop.permute.xlu1 %539 }
 0x33b   : > { %829 = vst.msk [vmem:[%s377_s8 + $0xc] sm:$0xf] %vm487_vm2, %v540_v33 }
 0x33c   : > { %1146 = shalt.err (!%p1143_p6)
}
 0x33d   : > { %s1147_s8 = scalar_lea.hbm %s1610_s15, 256  ;;  %s1151_s16 = scalar_lea.hbm %s1758_s6, 512 }
 0x33e   : > { %p1148_p3 = scmp.ne.s32.totalorder %s1610_s15, %s1147_s8  ;;  %p1152_p0 = scmp.lt.u32.totalorder %s1610_s15, %s1758_s6 }
 0x33f   : > { %p1153_p5 = scmp.lt.u32.totalorder %s1151_s16, %s1147_s8  ;;  %p1155_p11 = scmp.lt.u32.totalorder %s1147_s8, %s1610_s15 }
 0x340   : > { %p1149_p1 = pnand %p1148_p3, %p1784_p10 }
 0x341   : > { %p1154_p7 = por %p1153_p5, %p1152_p0 }
 0x342   : > { %p1150_p12 = pneg %p1149_p1 }
 0x343   : > { %p1156_p13 = por %p1155_p11, %p1154_p7 }
 0x345   : > { %p1157_p2 = pnand %p1156_p13, %p1150_p12 }
 0x347   : > { %1160 = shalt.err (!%p1157_p2)
}
 0x348   : > { %s1306_s30 = smov 4   ;;  %v498_v34 = vpop.permute.xlu1 %497  ;;  %s1641_s11 = scalar_lea.vmem [#allocation14], %s1586_s1 }
 0x349   : > { %877 = dma.vmem_to_hbm [thread:$0]  (%p1784_p10), %s1604_s21, 256, %s1610_s15, %s1613_s27, %s1764_s18, %s1764_s18, %s1306_s30  }
 0x34a   : > { %500 = vst.msk [vmem:[%s1641_s11] sm:$0xf] %vm487_vm2, %v498_v34  ;;  %s574_s8 = sshll.u32 %s1589_s20, 4  ;;  %s1658_s15 = scalar_lea.hbm %s1757_s5, %s1599_s13  ;;  %s1652_s8 = int_to_ptr.vmem [resolvable:$true] %s574_s8 }
 0x34b   : > { %s550_s10 = scalar_lea.sflag [#allocation4], %s1566_s2  ;;  %s1161_s16 = scalar_lea.vmem %s1652_s8, 256 }
 0x34c   : > { %v515_v35 = vpop.permute.xlu1 %514  ;;  %p1162_p8 = scmp.ne.s32.totalorder %s1652_s8, %s1161_s16  ;;  %s1307_s19 = smov [#allocation11]  }
 0x34d   : > { %824 = vst.msk [vmem:[%s1641_s11 + $0x4] sm:$0xf] %vm487_vm2, %v515_v35  ;;  %s1165_s12 = sshll.u32 %s1307_s19, 4  ;;  %s1166_s12 = int_to_ptr.vmem [resolvable:$false] %s1165_s12 }
 0x34e   : > { %p1163_p9 = pnand %p1162_p8, %p1784_p10  ;;  %s1167_s18 = scalar_lea.vmem %s1166_s12, 512 }
 0x34f   : > { %p1168_p6 = scmp.lt.s32.totalorder %s1652_s8, %s1166_s12  ;;  %p1169_p3 = scmp.lt.s32.totalorder %s1167_s18, %s1161_s16 }
 0x350   : > { %v530_v36 = vpop.permute.xlu1 %529  ;;  %p1164_p4 = pneg %p1163_p9 }
 0x351   : > { %827 = vst.msk [vmem:[%s1641_s11 + $0x8] sm:$0xf] %vm487_vm2, %v530_v36  ;;  %p1170_p1 = por %p1169_p3, %p1168_p6 }
 0x353   : > { %p1171_p12 = pnand %p1170_p1, %p1164_p4 }
 0x354   : > { %v505_v37 = vpop.permute.xlu1 %504 }
 0x355   : > { %822 = vst.msk [vmem:[%s1589_s20 + $0x4] sm:$0xf] %vm487_vm2, %v505_v37 }
 0x358   : > { %v520_v38 = vpop.permute.xlu1 %519 }
 0x359   : > { %825 = vst.msk [vmem:[%s1589_s20 + $0x8] sm:$0xf] %vm487_vm2, %v520_v38 }
 0x35a   : > { %1174 = shalt.err (!%p1171_p12)
}
 0x35b   : > { %s1175_s20 = scalar_lea.hbm %s1658_s15, 256  ;;  %s1179_s19 = scalar_lea.hbm %s1757_s5, 512 }
 0x35c   : > { %p1176_p0 = scmp.ne.s32.totalorder %s1658_s15, %s1175_s20  ;;  %p1180_p11 = scmp.lt.u32.totalorder %s1658_s15, %s1757_s5 }
 0x35d   : > { %p1181_p13 = scmp.lt.u32.totalorder %s1179_s19, %s1175_s20  ;;  %p1183_p8 = scmp.lt.u32.totalorder %s1175_s20, %s1658_s15 }
 0x35e   : > { %p1177_p5 = pnand %p1176_p0, %p1784_p10 }
 0x35f   : > { %p1182_p2 = por %p1181_p13, %p1180_p11 }
 0x360   : > { %p1178_p7 = pneg %p1177_p5 }
 0x361   : > { %p1184_p9 = por %p1183_p8, %p1182_p2 }
 0x363   : > { %p1185_p4 = pnand %p1184_p9, %p1178_p7 }
 0x365   : > { %1188 = shalt.err (!%p1185_p4)
}
 0x366   : > { %s1785_s18 = smov 64   ;;  %s1786_s14 = sshll.u32 %s1641_s11, 4  ;;  %v545_v39 = vpop.permute.xlu1 %544  ;;  %s1692_s14 = int_to_ptr.vmem [resolvable:$true] %s1786_s14 }
 0x367   : > { %876 = dma.vmem_to_hbm [thread:$0]  (%p1784_p10), %s1652_s8, 256, %s1658_s15, %s550_s10, %s1785_s18, %s1785_s18, %s1306_s30  }
 0x368   : > { %s1698_s1 = scalar_lea.hbm %s1759_s7, %s1599_s13  ;;  %830 = vst.msk [vmem:[%s1641_s11 + $0xc] sm:$0xf] %vm487_vm2, %v545_v39  ;;  %s1189_s2 = scalar_lea.vmem %s1692_s14, 256 }
 0x369   : > { %p1190_p6 = scmp.ne.s32.totalorder %s1692_s14, %s1189_s2  ;;  %s1308_s8 = smov [#allocation14]  }
 0x36a   : > { %s1193_s15 = sshll.u32 %s1308_s8, 4  ;;  %s1194_s15 = int_to_ptr.vmem [resolvable:$false] %s1193_s15 }
 0x36b   : > { %p1191_p3 = pnand %p1190_p6, %p1784_p10  ;;  %s1195_s10 = scalar_lea.vmem %s1194_s15, 512 }
 0x36c   : > { %p1196_p12 = scmp.lt.s32.totalorder %s1692_s14, %s1194_s15  ;;  %p1197_p0 = scmp.lt.s32.totalorder %s1195_s10, %s1189_s2 }
 0x36d   : > { %p1192_p1 = pneg %p1191_p3 }
 0x36e   : > { %p1198_p5 = por %p1197_p0, %p1196_p12 }
 0x370   : > { %p1199_p7 = pnand %p1198_p5, %p1192_p1 }
 0x372   : > { %1202 = shalt.err (!%p1199_p7)
}
 0x373   : > { %s1203_s13 = scalar_lea.hbm %s1698_s1, 256  ;;  %s1207_s19 = scalar_lea.hbm %s1759_s7, 512 }
 0x374   : > { %p1204_p11 = scmp.ne.s32.totalorder %s1698_s1, %s1203_s13  ;;  %p1208_p8 = scmp.lt.u32.totalorder %s1698_s1, %s1759_s7 }
 0x375   : > { %p1209_p9 = scmp.lt.u32.totalorder %s1207_s19, %s1203_s13  ;;  %p1211_p6 = scmp.lt.u32.totalorder %s1203_s13, %s1698_s1 }
 0x376   : > { %p1205_p13 = pnand %p1204_p11, %p1784_p10 }
 0x377   : > { %p1210_p4 = por %p1209_p9, %p1208_p8 }
 0x378   : > { %p1206_p2 = pneg %p1205_p13 }
 0x379   : > { %p1212_p3 = por %p1211_p6, %p1210_p4 }
 0x37b   : > { %p1213_p1 = pnand %p1212_p3, %p1206_p2 }
 0x37d   : > { %1216 = shalt.err (!%p1213_p1)
}
 0x37e   : > { %878 = dma.vmem_to_hbm [thread:$0]  (%p1784_p10), %s1692_s14, 256, %s1698_s1, %s1613_s27, %s1785_s18, %s1785_s18, %s1306_s30  }
 0x37f PF: > { %s623_s20 = sand.u32 1, %s1263_s24   ;;  %p1787_p12 = scmp.ne.s32.totalorder %s1777_s9, 0 }
 0x380   : > { %p1788_p0 = scmp.ge.s32.totalorder %s1283_s29, 2  ;;  %s624_s2 = scalar_lea.sflag [#allocation4], %s623_s20 }
 0x382   : > { %p900_p5 = pnand %p1788_p0, %p1787_p12 }
 0x384   : > { %1254 = dma.done.wait (!%p900_p5), %s624_s2, 256  }
 0x385   : > { %1256 = vsyncadd (!%p900_p5), %s624_s2, 4294967040  ;;  %s1789_s22 = sadd.s32 4294967294, %s1283_s29  }
 0x386   : > { %s632_s8 = sand.u32 1, %s1789_s22  }
 0x387   : > { %s633_s15 = scalar_lea.sflag [#allocation13], %s632_s8 }
 0x388   : > { %1258 = dma.done.wait (!%p900_p5), %s633_s15, 512  }
 0x389   : > { %1260 = vsyncadd (!%p900_p5), %s633_s15, 4294966784  ;;  %s29_s29 = sadd.s32 1, %s1283_s29   ;;  %s1790_s24 = smov %s1267_s25 }
 0x38a   : > { %p26_p10 = scmp.ge.s32.totalorder %s29_s29, 4   ;;  %s1791_s25 = smov %s1271_s26 }
 0x38b   : > { %s1792_s26 = smov %s1516_s23  ;;  %s1793_s27 = smov %s1279_s28 }
 0x38c   : > { %s1794_s28 = smov %s1796_s17  ;;  %28 = sbr.rel (!%p26_p10) target bundleno = 13 (0xd), region = 142 }
 0x393   :  { %647 = vsyncpa [#allocation3], 1 }
 0x394   :  { %649 = vsyncpa [#allocation3 + $0x1], 1 }
 0x395   :  { %650 = vsyncpa [#allocation6], 1 }
 0x396   :  { %651 = vsyncpa [#allocation9], 1 }
 0x397   :  { %652 = vsyncpa [#allocation4], 1 }
 0x398   :  { %654 = vsyncpa [#allocation4 + $0x1], 1 }
 0x399   :  { %655 = vsyncpa [#allocation13], 1 }
 0x39a   :  { %657 = vsyncpa [#allocation13 + $0x1], 1 }

</bundles_post_ra>
